<compile_context>
chip_gen: v7x
topology: tpu7x:2x2x1
jax: 0.10.0
libtpu: 0.0.40
codegen_flags: <defaults>
</compile_context>

<pallas_src>
import functools

import jax
import jax.numpy as jnp
from jax.experimental import pallas as pl
from jax.experimental.pallas import tpu as pltpu


def _round_up(x: int, m: int) -> int:
    return ((x + m - 1) // m) * m


def _vmem_capacity_bytes() -> int:
    """Per-core VMEM capacity; conservative fallback if the query fails."""
    try:
        return int(pltpu.get_tpu_info().vmem_capacity_bytes)
    except Exception:
        return 64 * 2**20  # v7x per-TC capacity (most restrictive generation)


# ---------------------------------------------------------------------------
# Path A: VMEM-resident table + one-hot MXU matmul gather.
# ---------------------------------------------------------------------------

def _onehot_matmul_kernel(idx_ref, table_ref, out_ref):
    """out[r, :] = table[idx[r], :] via a one-hot MXU matmul.

    idx_ref:   VMEM (block_rows, 1) int32 block of label indices.
    table_ref: VMEM (nc_pad, d_pad) resident table (constant block index).
    out_ref:   VMEM (block_rows, d_pad) dense, lane-aligned output block.
    """
    idx = idx_ref[...]                                   # (block_rows, 1)
    block_rows = idx.shape[0]
    nc_pad = table_ref.shape[0]
    classes = jax.lax.broadcasted_iota(jnp.int32, (block_rows, nc_pad), 1)
    onehot = (classes == idx).astype(table_ref.dtype)    # exact 0/1 weights
    out_ref[...] = jnp.dot(
        onehot, table_ref[...], preferred_element_type=jnp.float32
    ).astype(out_ref.dtype)


def _onehot_resident_call(table, idx_col, n_pad, block_rows, vmem_limit,
                          single_buffer_table):
    nc_pad, d_pad = table.shape
    if single_buffer_table:
        # Constant index_map -> the block never changes; one buffer suffices
        # and halves the table's VMEM footprint.
        table_spec = pl.BlockSpec((nc_pad, d_pad), lambda i: (0, 0),
                                  pipeline_mode=pl.Buffered(1))
    else:
        table_spec = pl.BlockSpec((nc_pad, d_pad), lambda i: (0, 0))

    grid_spec = pltpu.PrefetchScalarGridSpec(
        num_scalar_prefetch=0,
        grid=(n_pad // block_rows,),
        in_specs=[
            pl.BlockSpec((block_rows, 1), lambda i: (i, 0)),
            table_spec,
        ],
        out_specs=pl.BlockSpec((block_rows, d_pad), lambda i: (i, 0)),
    )
    return pl.pallas_call(
        _onehot_matmul_kernel,
        out_shape=jax.ShapeDtypeStruct((n_pad, d_pad), table.dtype),
        grid_spec=grid_spec,
        compiler_params=pltpu.CompilerParams(
            dimension_semantics=("parallel",),
            vmem_limit_bytes=vmem_limit,
        ),
    )(idx_col, table)


def _lookup_onehot_resident(table, idx, n, vmem_cap):
    nc, d = table.shape
    nc_pad = _round_up(nc, 8)
    d_pad = _round_up(d, 128)
    if (nc_pad, d_pad) != (nc, d):
        # Only small tables take this path; the module class pre-pads so this
        # is normally a no-op.
        table = jnp.pad(table, ((0, nc_pad - nc), (0, d_pad - d)))
    itemsize = jnp.dtype(table.dtype).itemsize

    # Large row blocks amortize per-grid-step overhead; cap so the f32 one-hot
    # intermediate stays ~1 MiB.
    onehot_budget = 1 << 20
    max_rows = max(8, ((onehot_budget // (4 * nc_pad)) // 8) * 8)
    block_rows = int(min(512, max_rows, _round_up(max(n, 1), 8)))
    n_pad = _round_up(max(n, 1), block_rows)

    idx_col = jnp.pad(idx, (0, n_pad - n)).reshape(n_pad, 1)

    table_bytes = nc_pad * d_pad * itemsize
    out_block_bytes = block_rows * d_pad * itemsize
    needed = table_bytes + 2 * out_block_bytes + 2 * block_rows * 4
    # Generation-aware cap; leave headroom for a second table buffer in case
    # the single-buffered spec is rejected and we fall back.
    vmem_limit = int(min(int(0.92 * vmem_cap),
                         max(needed + table_bytes + (4 << 20), 32 << 20)))

    try:
        return _onehot_resident_call(table, idx_col, n_pad, block_rows,
                                     vmem_limit, True)
    except Exception:
        # Fallback if this jax/Mosaic build rejects single-buffered inputs.
        return _onehot_resident_call(table, idx_col, n_pad, block_rows,
                                     vmem_limit, False)


# ---------------------------------------------------------------------------
# Path B: table in HBM, manual DMA row-gather (N*D HBM traffic, not NC*D).
# ---------------------------------------------------------------------------

_GATHER_BLOCK_ROWS = 16  # row DMAs in flight per grid step


def _dma_gather_kernel(idx_ref, table_hbm, out_ref, buf, sems, *, block_rows):
    """Gather block_rows table rows from HBM with concurrent DMAs.

    idx_ref:   SMEM (n_pad,) int32 scalar-prefetched label indices.
    table_hbm: HBM/ANY (num_rows, d) embedding table (no auto-DMA).
    out_ref:   VMEM (block_rows, d) output block.
    buf:       VMEM (block_rows, d) staging buffer.
    sems:      (block_rows,) DMA semaphores.
    """
    base = pl.program_id(0) * block_rows
    for r in range(block_rows):
        row = idx_ref[base + r]
        pltpu.make_async_copy(
            table_hbm.at[pl.ds(row, 1), :], buf.at[pl.ds(r, 1), :], sems.at[r]
        ).start()
    for r in range(block_rows):
        pltpu.make_async_copy(
            table_hbm.at[pl.ds(0, 1), :], buf.at[pl.ds(r, 1), :], sems.at[r]
        ).wait()
    out_ref[...] = buf[...]


def _lookup_dma_gather(table, idx, n):
    num_rows, d = table.shape
    block_rows = _GATHER_BLOCK_ROWS
    n_pad = _round_up(max(n, 1), block_rows)
    num_blocks = n_pad // block_rows
    idx_pad = jnp.pad(idx, (0, n_pad - n))

    kernel = functools.partial(_dma_gather_kernel, block_rows=block_rows)
    grid_spec = pltpu.PrefetchScalarGridSpec(
        num_scalar_prefetch=1,
        grid=(num_blocks,),
        in_specs=[pl.BlockSpec(memory_space=pl.ANY)],   # table stays in HBM
        out_specs=pl.BlockSpec((block_rows, d), lambda i, idx_ref: (i, 0)),
        scratch_shapes=[
            pltpu.VMEM((block_rows, d), table.dtype),
            pltpu.SemaphoreType.DMA((block_rows,)),
        ],
    )
    return pl.pallas_call(
        kernel,
        out_shape=jax.ShapeDtypeStruct((n_pad, d), table.dtype),
        grid_spec=grid_spec,
        compiler_params=pltpu.CompilerParams(
            dimension_semantics=("parallel",),
        ),
    )(idx_pad, table)


# ---------------------------------------------------------------------------
# Dispatcher + module wrapper.
# ---------------------------------------------------------------------------

def label_embedding_lookup(embedding_table: jax.Array,
                           label_indices: jax.Array,
                           *, valid_rows: int = None,
                           out_dim: int = None) -> jax.Array:
    """Pallas equivalent of LabelEmbeddings.forward (embedding row gather)."""
    nc, d = embedding_table.shape
    valid_rows = nc if valid_rows is None else int(valid_rows)
    out_dim = d if out_dim is None else int(out_dim)
    n = int(label_indices.shape[0])

    # nn.Embedding raises on OOB indices; we clamp instead of faulting a DMA.
    idx = jnp.clip(label_indices.astype(jnp.int32), 0, valid_rows - 1)

    itemsize = jnp.dtype(embedding_table.dtype).itemsize
    vmem_cap = _vmem_capacity_bytes()
    nc_pad = _round_up(nc, 8)
    d_pad = _round_up(d, 128)
    table_resident_bytes = nc_pad * d_pad * itemsize

    small_table = nc_pad <= 2048
    fits_vmem = table_resident_bytes <= int(0.55 * vmem_cap)
    # If only a small fraction of a non-trivial table is needed, the HBM
    # DMA-gather reads N*D instead of num_classes*D.
    sparse_use = (n * 4 < valid_rows) and (table_resident_bytes > (2 << 20))

    if small_table and fits_vmem and not sparse_use:
        out = _lookup_onehot_resident(embedding_table, idx, n, vmem_cap)
    else:
        out = _lookup_dma_gather(embedding_table, idx, n)
    return out[:n, :out_dim]


class LabelEmbeddingsPallas:
    """JAX/Pallas port of the PyTorch LabelEmbeddings module."""

    def __init__(self, num_classes: int, embedding_dim: int, key: jax.Array):
        self.num_classes = num_classes
        self.embedding_dim = embedding_dim
        # nn.Embedding default init: weight ~ N(0, 1). Deterministic via key.
        self.weight = jax.random.normal(
            key, (num_classes, embedding_dim), dtype=jnp.float32)
        # Pre-pad the table ONCE (rows -> multiple of 8, cols -> multiple of
        # 128) so the per-call path never re-pads / copies the table in HBM.
        nc_pad = _round_up(num_classes, 8)
        d_pad = _round_up(embedding_dim, 128)
        self._table = jnp.pad(
            self.weight,
            ((0, nc_pad - num_classes), (0, d_pad - embedding_dim)))

    def __call__(self, label_indices: jax.Array) -> jax.Array:
        return label_embedding_lookup(
            self._table, label_indices,
            valid_rows=self.num_classes, out_dim=self.embedding_dim)


if __name__ == "__main__":
    key = jax.random.PRNGKey(0)
    k_w, k_idx, k_w2, k_idx2 = jax.random.split(key, 4)

    # Small module matching the PyTorch spec's typical usage.
    num_classes, embedding_dim = 16, 32
    module = LabelEmbeddingsPallas(num_classes, embedding_dim, k_w)

    # 1) All-label lookup (torch.arange(num_classes)) -> resident one-hot path.
    all_idx = jnp.arange(num_classes, dtype=jnp.int32)
    out = jax.block_until_ready(module(all_idx))
    ref = jnp.take(module.weight, all_idx, axis=0)
    assert out.shape == (num_classes, embedding_dim)
    assert out.dtype == jnp.float32
    assert bool(jnp.allclose(out, ref))

    # 2) Scrambled / repeated / non-block-multiple index set.
    rand_idx = jax.random.randint(k_idx, (10,), 0, num_classes, dtype=jnp.int32)
    out2 = jax.block_until_ready(module(rand_idx))
    ref2 = jnp.take(module.weight, rand_idx, axis=0)
    assert out2.shape == (10, embedding_dim)
    assert bool(jnp.allclose(out2, ref2))

    # 3) Larger class count -> exercises the HBM DMA-gather path (N << classes).
    big = LabelEmbeddingsPallas(4096, embedding_dim, k_w2)
    big_idx = jax.random.randint(k_idx2, (24,), 0, 4096, dtype=jnp.int32)
    out3 = jax.block_until_ready(big(big_idx))
    ref3 = jnp.take(big.weight, big_idx, axis=0)
    assert out3.shape == (24, embedding_dim)
    assert bool(jnp.allclose(out3, ref3))

    print("KERNEL_OK")
</pallas_src>

<mosaic_0001>
module attributes {stable_mosaic.version = 11 : i64} {
  func.func @_onehot_matmul_kernel(%arg0: i32, %arg1: memref<16x1xi32, #tpu.memory_space<vmem>>, %arg2: memref<16x128xf32, #tpu.memory_space<vmem>>, %arg3: memref<16x128xf32, #tpu.memory_space<vmem>>) attributes {dimension_semantics = [#tpu.dimension_semantics<parallel>], iteration_bounds = array<i64: 1>, scalar_prefetch = 0 : i64, scratch_operands = 0 : i64, tpu.core_type = #tpu.core_type<tc>, window_params = [{transform_indices = @transform_0, window_bounds = array<i64: 16, 1>}, {pipeline_mode = #tpu.pipeline_mode<synchronous>, transform_indices = @transform_1, window_bounds = array<i64: 16, 128>}, {transform_indices = @transform_2, window_bounds = array<i64: 16, 128>}]} {
    %c0 = arith.constant 0 : index
    %c0_0 = arith.constant 0 : index
    %0 = vector.load %arg1[%c0, %c0_0] : memref<16x1xi32, #tpu.memory_space<vmem>>, vector<16x1xi32>
    %1 = tpu.iota {dimensions = array<i32: 1>} : vector<16x16xi32>
    %2 = vector.broadcast %0 : vector<16x1xi32> to vector<16x16xi32>
    %3 = arith.cmpi eq, %1, %2 : vector<16x16xi32>
    %4 = arith.extui %3 : vector<16x16xi1> to vector<16x16xi32>
    %5 = arith.sitofp %4 : vector<16x16xi32> to vector<16x16xf32>
    %c0_1 = arith.constant 0 : index
    %c0_2 = arith.constant 0 : index
    %6 = vector.load %arg2[%c0_1, %c0_2] : memref<16x128xf32, #tpu.memory_space<vmem>>, vector<16x128xf32>
    %cst = arith.constant dense<0.000000e+00> : vector<16x128xf32>
    %7 = tpu.matmul %5, %6, %cst {dimension_numbers = #tpu.dot_dimension_numbers<[1], [0], [0], [1], [0, 0, 1, 1], [], []>} : vector<16x16xf32>, vector<16x128xf32>, vector<16x128xf32> -> vector<16x128xf32>
    %c0_3 = arith.constant 0 : index
    %c0_4 = arith.constant 0 : index
    %8 = vector.load %arg3[%c0_3, %c0_4] : memref<16x128xf32, #tpu.memory_space<vmem>>, vector<16x128xf32>
    tpu.vector_store %arg3[%c0_3, %c0_4], %7 {strides = array<i32>} : memref<16x128xf32, #tpu.memory_space<vmem>>, vector<16x128xf32>,
    return
  }
  func.func @transform_0(%arg0: i32) -> (i32, i32) {
    %c0_i32 = arith.constant 0 : i32
    %c0_i32_0 = arith.constant 0 : i32
    return %arg0, %c0_i32 : i32, i32
  }
  func.func @transform_1(%arg0: i32) -> (i32, i32) {
    %c0_i32 = arith.constant 0 : i32
    %c0_i32_0 = arith.constant 0 : i32
    %c0_i32_1 = arith.constant 0 : i32
    return %c0_i32, %c0_i32_0 : i32, i32
  }
  func.func @transform_2(%arg0: i32) -> (i32, i32) {
    %c0_i32 = arith.constant 0 : i32
    %c0_i32_0 = arith.constant 0 : i32
    return %arg0, %c0_i32 : i32, i32
  }
}

module attributes {stable_mosaic.version = 11 : i64} {
  func.func @_onehot_matmul_kernel(%arg0: i32, %arg1: memref<16x1xi32, #tpu.memory_space<vmem>>, %arg2: memref<16x128xf32, #tpu.memory_space<vmem>>, %arg3: memref<16x128xf32, #tpu.memory_space<vmem>>) attributes {dimension_semantics = [#tpu.dimension_semantics<parallel>], iteration_bounds = array<i64: 1>, scalar_prefetch = 0 : i64, scratch_operands = 0 : i64, tpu.core_type = #tpu.core_type<tc>, window_params = [{transform_indices = @transform_0, window_bounds = array<i64: 16, 1>}, {pipeline_mode = #tpu.pipeline_mode<synchronous>, transform_indices = @transform_1, window_bounds = array<i64: 16, 128>}, {transform_indices = @transform_2, window_bounds = array<i64: 16, 128>}]} {
    %c0 = arith.constant 0 : index
    %c0_0 = arith.constant 0 : index
    %0 = vector.load %arg1[%c0, %c0_0] : memref<16x1xi32, #tpu.memory_space<vmem>>, vector<16x1xi32>
    %1 = tpu.iota {dimensions = array<i32: 1>} : vector<16x16xi32>
    %2 = vector.broadcast %0 : vector<16x1xi32> to vector<16x16xi32>
    %3 = arith.cmpi eq, %1, %2 : vector<16x16xi32>
    %4 = arith.extui %3 : vector<16x16xi1> to vector<16x16xi32>
    %5 = arith.sitofp %4 : vector<16x16xi32> to vector<16x16xf32>
    %c0_1 = arith.constant 0 : index
    %c0_2 = arith.constant 0 : index
    %6 = vector.load %arg2[%c0_1, %c0_2] : memref<16x128xf32, #tpu.memory_space<vmem>>, vector<16x128xf32>
    %cst = arith.constant dense<0.000000e+00> : vector<16x128xf32>
    %7 = tpu.matmul %5, %6, %cst {dimension_numbers = #tpu.dot_dimension_numbers<[1], [0], [0], [1], [0, 0, 1, 1], [], []>} : vector<16x16xf32>, vector<16x128xf32>, vector<16x128xf32> -> vector<16x128xf32>
    %c0_3 = arith.constant 0 : index
    %c0_4 = arith.constant 0 : index
    %8 = vector.load %arg3[%c0_3, %c0_4] : memref<16x128xf32, #tpu.memory_space<vmem>>, vector<16x128xf32>
    tpu.vector_store %arg3[%c0_3, %c0_4], %7 {strides = array<i32>} : memref<16x128xf32, #tpu.memory_space<vmem>>, vector<16x128xf32>,
    return
  }
  func.func @transform_0(%arg0: i32) -> (i32, i32) {
    %c0_i32 = arith.constant 0 : i32
    %c0_i32_0 = arith.constant 0 : i32
    return %arg0, %c0_i32 : i32, i32
  }
  func.func @transform_1(%arg0: i32) -> (i32, i32) {
    %c0_i32 = arith.constant 0 : i32
    %c0_i32_0 = arith.constant 0 : i32
    %c0_i32_1 = arith.constant 0 : i32
    return %c0_i32, %c0_i32_0 : i32, i32
  }
  func.func @transform_2(%arg0: i32) -> (i32, i32) {
    %c0_i32 = arith.constant 0 : i32
    %c0_i32_0 = arith.constant 0 : i32
    return %arg0, %c0_i32 : i32, i32
  }
}

</mosaic_0001>

<bundles_post_ra>
// kernel: tpu_custom_call.1
= control target key start
LH: loop header
LB: loop body
LE: loop exit
PB: predicated region body
PF: predicated region fallthrough
CT: control target
= control target key end

     0   :  { %s223_s0 = inlined_call_operand.vmem [shape: s32[16,1], index: 0, kind: input, shape index: {}]   ;;  %s224_s1 = inlined_call_operand.vmem [shape: f32[16,128], index: 1, kind: input, shape index: {}]   ;;  %s225_s2 = inlined_call_operand.hbm [shape: f32[16,128], index: 2, kind: output, shape index: {}]  }
   0x1   :  { %v12_v0 = vld [vmem:[%s223_s0] sm:$0xff] }
   0x2   :  { %7 = vsyncpa [#allocation3], 0  ;;  %v179_v1 = vmov 0   ;;  %v28_v2 = vld [vmem:[%s224_s1] sm:$0xff]  ;;  %v29_v3 = vld [vmem:[%s224_s1 + $0x8] sm:$0xff]  ;;  %v14_v6 = vlaneseq  ;;  %vm30_vm0 = vcmask 130048  }
   0x3   :  { %154 = vset.pattern.permute.xlu0 %v179_v1  ;;  %v145_v4 = vpack.c.bf16 %v29_v3, %v28_v2  ;;  %v13_v5 = vld [vmem:[%s223_s0 + $0x8] sm:$0xff]  ;;  %v180_v9 = vmov 0.0   ;;  %s181_s1 = smov [#allocation2]  }
   0x4   :  { %17 = vperm.xlu0 %154, %v12_v0   ;;  %v15_v7 = vand.u32 127, %v14_v6  ;;  %s119_s17 = sshll.u32 %s181_s1, 4  ;;  %s120_s17 = int_to_ptr.vmem [resolvable:$true] %s119_s17 }
   0x5   :  { %146 = vmatprep.subr.bf16.mxu0 %v145_v4  ;;  %s155_s0 = scalar_lea.vmem %s120_s17, 256  ;;  %p160_p1 = scmp.lt.s32.totalorder %s120_s17, %s120_s17 }
   0x6   :  { %148 = vmatpush3.bf16.msra.mxu0 %v145_v4  ;;  %p156_p0 = scmp.ne.s32.totalorder %s120_s17, %s155_s0  ;;  %p161_p2 = scmp.lt.s32.totalorder %s155_s0, %s155_s0 }
   0x8   :  { %20 = vperm.xlu0 %154, %v13_v5   ;;  %p162_p3 = por %p161_p2, %p160_p1 }
   0xa   :  { %p163_p4 = pnand %p162_p3, %p156_p0 }
  0x83   :  { %v18_v8 = vpop.permute.xlu0 %17 }
  0x84   :  { %vm22_vm1 = vcmp.eq.s32.totalorder %v15_v7, %v18_v8 }
  0x85   :  { %v130_v10 = vsel %vm22_vm1, 1.0, %v180_v9 }
  0x86   :  { %142 = vmatprep.mubr.msk.f32.mxu0 %vm30_vm0, %v130_v10 }
  0x87   :  { %v21_v11 = vpop.permute.xlu0 %20 }
  0x88   :  { %vm23_vm2 = vcmp.eq.s32.totalorder %v15_v7, %v21_v11 }
  0x89   :  { %v131_v12 = vsel %vm23_vm2, 1.0, %v180_v9 }
  0x8a   :  { %143 = vmatmul.mubr.msk.f32.vlgmr.msra.gmra.mrb[0].mxu0 %vm30_vm0, %v131_v12 }
 0x15d   :  { %v144_v13 = vpop.f32.mrb[0].mxu0 }
 0x15e   :  { %113 = vst [vmem:[#allocation2 + $0x8] sm:$0xff] %v144_v13  ;;  %v103_v14 = vpop.f32.mrb[1].mxu0 }
 0x15f   :  { %112 = vst [vmem:[#allocation2] sm:$0xff] %v103_v14 }
 0x160   :  { %166 = shalt.err (!%p163_p4)
}
 0x161   :  { %s167_s20 = scalar_lea.hbm %s225_s2, 256 }
 0x162   :  { %p168_p5 = scmp.ne.s32.totalorder %s225_s2, %s167_s20  ;;  %p171_p6 = scmp.lt.u32.totalorder %s167_s20, %s225_s2 }
 0x164   :  { %p173_p7 = pnand %p171_p6, %p168_p5 }
 0x166   :  { %176 = shalt.err (!%p173_p7)
}
 0x167   :  { %s182_s25 = smov 128   ;;  %s183_s26 = smov 8  }
 0x168   :  { %125 = dma.vmem_to_hbm [thread:$0]  %s120_s17, 256, %s225_s2, [#allocation3], %s182_s25, %s182_s25, %s183_s26  }
 0x169   :  { %177 = dma.done.wait [#allocation3], 256  }
 0x16a   :  { %178 = vsyncadd [#allocation3], 4294967040 }
 0x16b   :  { %129 = vsyncpa [#allocation3], 1 }

// kernel: tpu_custom_call.1
= control target key start
LH: loop header
LB: loop body
LE: loop exit
PB: predicated region body
PF: predicated region fallthrough
CT: control target
= control target key end

     0   :  { %s223_s0 = inlined_call_operand.vmem [shape: s32[16,1], index: 0, kind: input, shape index: {}]   ;;  %s224_s1 = inlined_call_operand.vmem [shape: f32[16,128], index: 1, kind: input, shape index: {}]   ;;  %s225_s2 = inlined_call_operand.hbm [shape: f32[16,128], index: 2, kind: output, shape index: {}]  }
   0x1   :  { %v12_v0 = vld [vmem:[%s223_s0] sm:$0xff] }
   0x2   :  { %7 = vsyncpa [#allocation3], 0  ;;  %v179_v1 = vmov 0   ;;  %v28_v2 = vld [vmem:[%s224_s1] sm:$0xff]  ;;  %v29_v3 = vld [vmem:[%s224_s1 + $0x8] sm:$0xff]  ;;  %v14_v6 = vlaneseq  ;;  %vm30_vm0 = vcmask 130048  }
   0x3   :  { %154 = vset.pattern.permute.xlu0 %v179_v1  ;;  %v145_v4 = vpack.c.bf16 %v29_v3, %v28_v2  ;;  %v13_v5 = vld [vmem:[%s223_s0 + $0x8] sm:$0xff]  ;;  %v180_v9 = vmov 0.0   ;;  %s181_s1 = smov [#allocation2]  }
   0x4   :  { %17 = vperm.xlu0 %154, %v12_v0   ;;  %v15_v7 = vand.u32 127, %v14_v6  ;;  %s119_s17 = sshll.u32 %s181_s1, 4  ;;  %s120_s17 = int_to_ptr.vmem [resolvable:$true] %s119_s17 }
   0x5   :  { %146 = vmatprep.subr.bf16.mxu0 %v145_v4  ;;  %s155_s0 = scalar_lea.vmem %s120_s17, 256  ;;  %p160_p1 = scmp.lt.s32.totalorder %s120_s17, %s120_s17 }
   0x6   :  { %148 = vmatpush3.bf16.msra.mxu0 %v145_v4  ;;  %p156_p0 = scmp.ne.s32.totalorder %s120_s17, %s155_s0  ;;  %p161_p2 = scmp.lt.s32.totalorder %s155_s0, %s155_s0 }
   0x8   :  { %20 = vperm.xlu0 %154, %v13_v5   ;;  %p162_p3 = por %p161_p2, %p160_p1 }
   0xa   :  { %p163_p4 = pnand %p162_p3, %p156_p0 }
  0x83   :  { %v18_v8 = vpop.permute.xlu0 %17 }
  0x84   :  { %vm22_vm1 = vcmp.eq.s32.totalorder %v15_v7, %v18_v8 }
  0x85   :  { %v130_v10 = vsel %vm22_vm1, 1.0, %v180_v9 }
  0x86   :  { %142 = vmatprep.mubr.msk.f32.mxu0 %vm30_vm0, %v130_v10 }
  0x87   :  { %v21_v11 = vpop.permute.xlu0 %20 }
  0x88   :  { %vm23_vm2 = vcmp.eq.s32.totalorder %v15_v7, %v21_v11 }
  0x89   :  { %v131_v12 = vsel %vm23_vm2, 1.0, %v180_v9 }
  0x8a   :  { %143 = vmatmul.mubr.msk.f32.vlgmr.msra.gmra.mrb[0].mxu0 %vm30_vm0, %v131_v12 }
 0x15d   :  { %v144_v13 = vpop.f32.mrb[0].mxu0 }
 0x15e   :  { %113 = vst [vmem:[#allocation2 + $0x8] sm:$0xff] %v144_v13  ;;  %v103_v14 = vpop.f32.mrb[1].mxu0 }
 0x15f   :  { %112 = vst [vmem:[#allocation2] sm:$0xff] %v103_v14 }
 0x160   :  { %166 = shalt.err (!%p163_p4)
}
 0x161   :  { %s167_s20 = scalar_lea.hbm %s225_s2, 256 }
 0x162   :  { %p168_p5 = scmp.ne.s32.totalorder %s225_s2, %s167_s20  ;;  %p171_p6 = scmp.lt.u32.totalorder %s167_s20, %s225_s2 }
 0x164   :  { %p173_p7 = pnand %p171_p6, %p168_p5 }
 0x166   :  { %176 = shalt.err (!%p173_p7)
}
 0x167   :  { %s182_s25 = smov 128   ;;  %s183_s26 = smov 8  }
 0x168   :  { %125 = dma.vmem_to_hbm [thread:$0]  %s120_s17, 256, %s225_s2, [#allocation3], %s182_s25, %s182_s25, %s183_s26  }
 0x169   :  { %177 = dma.done.wait [#allocation3], 256  }
 0x16a   :  { %178 = vsyncadd [#allocation3], 4294967040 }
 0x16b   :  { %129 = vsyncpa [#allocation3], 1 }

</bundles_post_ra>
